<compile_context>
chip_gen: v7x
topology: tpu7x:2x2x1
jax: 0.10.0
libtpu: 0.0.40
codegen_flags: <defaults>
</compile_context>

<pallas_src>
import jax
import jax.numpy as jnp
from jax import lax
from jax.experimental import pallas as pl
from jax.experimental.pallas import tpu as pltpu

LANE = 128  # lane width; 256-granule padding is a sweep option on v6e/v7x


def _round_up(n, m):
    return ((n + m - 1) // m) * m


def _make_fused_net_kernel(num_layers):
    """Build a kernel that applies `num_layers` FF layers back-to-back."""

    def kernel(x_ref, *refs):
        # refs layout: w0, b0, w1, b1, ..., w_{L-1}, b_{L-1}, o_ref
        o_ref = refs[-1]
        wb_refs = refs[:-1]

        h = x_ref[...].astype(jnp.float32)                      # [TB, D0p]
        for l in range(num_layers):
            w = wb_refs[2 * l][...]                             # [Dlp, Dl1p] bf16
            b = wb_refs[2 * l + 1][...]                         # [1, Dl1p]   f32

            # torch.nn.functional.normalize: x / max(||x||_2, 1e-12).
            # rsqrt(max(sq, eps^2)) == 1 / max(sqrt(sq), eps) (sqrt monotone).
            # The per-row scale distributes over the matmul, so the dot runs on
            # raw h (MXU overlaps the XLU reduce + EUP rsqrt) and the scale is
            # applied on the [TB, OUT] tile fused with the bias add.
            sq = jnp.sum(h * h, axis=1, keepdims=True)          # [TB, 1]  (XLU)
            inv = lax.rsqrt(jnp.maximum(sq, 1e-24))             # EUP
            y = jnp.dot(h.astype(jnp.bfloat16), w,
                        preferred_element_type=jnp.float32)     # MXU, f32 acc
            h = jnp.maximum(y * inv + b, 0.0)                   # [TB, OUTp]

        o_ref[...] = h

    return kernel


def net_forward(x, params, *, batch_tile=512):
    """Fused Net.forward.

    x:      [B, IN0] float array.
    params: list of (w_t, b) with w_t: [in, out] (== torch W.T), b: [out].
    """
    B, in0 = x.shape
    num_layers = len(params)

    dims = [in0] + [w.shape[1] for w, _ in params]
    pdims = [_round_up(d, LANE) for d in dims]

    # Pad weights/biases to lane-dense shapes; weights stored bf16 for the MXU.
    wb_inputs = []
    for l, (w, b) in enumerate(params):
        inp, outp = pdims[l], pdims[l + 1]
        w_p = jnp.zeros((inp, outp), jnp.bfloat16)
        w_p = w_p.at[: w.shape[0], : w.shape[1]].set(w.astype(jnp.bfloat16))
        b_p = jnp.zeros((1, outp), jnp.float32)
        b_p = b_p.at[:, : b.shape[-1]].set(b.reshape(1, -1).astype(jnp.float32))
        wb_inputs.extend([w_p, b_p])

    # All layer weights are held resident in VMEM simultaneously; guard it.
    weight_bytes = sum(pdims[l] * pdims[l + 1] * 2 + pdims[l + 1] * 4
                       for l in range(num_layers))
    if weight_bytes > 48 * 1024 * 1024:
        # TODO(synk): stream weights per layer (layer grid axis or
        # pltpu.emit_pipeline over the weight list) instead of holding all
        # layers resident; required for very wide/deep nets on v7x (64 MiB/TC).
        raise ValueError("layer weights too large to keep resident in VMEM")

    # Batch tile: multiple of 16 (bf16 packs 16 sublanes per vreg).  Prefer at
    # least 2 grid steps so the "parallel" axis can shard across both
    # TensorCores on v7x.
    tb = min(_round_up(batch_tile, 16), _round_up(B, 16))
    if _round_up(B, tb) == tb and B > 16:
        tb = max(16, _round_up((B + 1) // 2, 16))
    b_pad = _round_up(B, tb)

    # Explicit VMEM budget: weights (x2 covers the double-buffered fallback),
    # double-buffered input/output tiles, intermediate-activation headroom.
    max_pd = max(pdims)
    vmem_need = (2 * weight_bytes
                 + 2 * tb * pdims[0] * 4
                 + 2 * tb * pdims[-1] * 4
                 + 2 * tb * max_pd * 4
                 + (4 << 20))
    vmem_limit = max(32 << 20, min(vmem_need, 64 << 20))  # safe on v5e/v6e/v7x

    # Advisory cost hint for XLA's scheduler around the custom call.
    flops = 2 * b_pad * sum(pdims[l] * pdims[l + 1] for l in range(num_layers))
    cost = pl.CostEstimate(
        flops=flops,
        transcendentals=b_pad * num_layers,  # one rsqrt per row per layer
        bytes_accessed=b_pad * pdims[0] * 4 + b_pad * pdims[-1] * 4 + weight_bytes,
    )

    # Skip the wrapper-side pad copy when shapes already line up (mem-bound
    # regime: an unconditional pad is an extra HBM read+write of x).
    if (b_pad != B) or (pdims[0] != in0) or (x.dtype != jnp.float32):
        x_p = jnp.zeros((b_pad, pdims[0]), jnp.float32)
        x_p = x_p.at[:B, :in0].set(x.astype(jnp.float32))
    else:
        x_p = x

    def run(single_buffer_consts):
        # Constant-index_map weight/bias blocks never change across grid steps;
        # single-buffering them halves their VMEM footprint.
        kw = {"pipeline_mode": pl.Buffered(1)} if single_buffer_consts else {}
        in_specs = [pl.BlockSpec((tb, pdims[0]), lambda i: (i, 0))]
        for l in range(num_layers):
            inp, outp = pdims[l], pdims[l + 1]
            in_specs.append(pl.BlockSpec((inp, outp), lambda i: (0, 0), **kw))
            in_specs.append(pl.BlockSpec((1, outp), lambda i: (0, 0), **kw))
        out = pl.pallas_call(
            _make_fused_net_kernel(num_layers),
            out_shape=jax.ShapeDtypeStruct((b_pad, pdims[-1]), jnp.float32),
            grid=(b_pad // tb,),
            in_specs=in_specs,
            out_specs=pl.BlockSpec((tb, pdims[-1]), lambda i: (i, 0)),
            compiler_params=pltpu.CompilerParams(
                dimension_semantics=("parallel",),
                vmem_limit_bytes=int(vmem_limit)),
            cost_estimate=cost,
        )(x_p, *wb_inputs)
        return jax.block_until_ready(out)

    try:
        out_p = run(True)
    except Exception:
        # Fallback if pipeline_mode=pl.Buffered(1) is unsupported on this build.
        out_p = run(False)

    if (b_pad != B) or (pdims[-1] != dims[-1]):
        out_p = out_p[:B, : dims[-1]]
    return out_p


def init_net_params(dims, key):
    """Deterministic nn.Linear-style init: U(-1/sqrt(fan_in), 1/sqrt(fan_in))."""
    params = []
    for d in range(len(dims) - 1):
        in_f, out_f = dims[d], dims[d + 1]
        key, kw, kb = jax.random.split(key, 3)
        bound = 1.0 / jnp.sqrt(jnp.float32(in_f))
        # Store weight pre-transposed as [in, out] (== W.T of torch's [out, in]).
        w_t = jax.random.uniform(kw, (in_f, out_f), jnp.float32, -bound, bound)
        b = jax.random.uniform(kb, (out_f,), jnp.float32, -bound, bound)
        params.append((w_t, b))
    return params


def net_forward_ref(x, params):
    """Pure-JAX f32 reference (mirrors the PyTorch module exactly)."""
    h = x.astype(jnp.float32)
    for w_t, b in params:
        norm = jnp.maximum(jnp.linalg.norm(h, axis=1, keepdims=True), 1e-12)
        h = jnp.maximum(jnp.dot(h / norm, w_t) + b[None, :], 0.0)
    return h


if __name__ == "__main__":
    key = jax.random.PRNGKey(0)
    key, kx = jax.random.split(key)

    # Small shapes consistent with the module: dims list defines the MLP.
    dims = [32, 64, 48]          # two Layer modules: 32->64, 64->48
    batch = 8
    x = jax.random.normal(kx, (batch, dims[0]), jnp.float32)

    params = init_net_params(dims, key)

    out = net_forward(x, params)
    out = jax.block_until_ready(out)

    ref = net_forward_ref(x, params)
    assert out.shape == (batch, dims[-1])
    # Tolerance relaxed for bf16 MXU inputs (f32 accumulation); intentional
    # divergence from the all-f32 PyTorch reference.
    assert jnp.allclose(out, ref, atol=2e-2, rtol=2e-2), "mismatch vs reference"

    print("KERNEL_OK")
</pallas_src>

<mosaic_0001>
module attributes {stable_mosaic.version = 11 : i64} {
  func.func @kernel(%arg0: i32, %arg1: memref<16x128xf32, #tpu.memory_space<vmem>>, %arg2: memref<128x128xbf16, #tpu.memory_space<vmem>>, %arg3: memref<1x128xf32, #tpu.memory_space<vmem>>, %arg4: memref<128x128xbf16, #tpu.memory_space<vmem>>, %arg5: memref<1x128xf32, #tpu.memory_space<vmem>>, %arg6: memref<16x128xf32, #tpu.memory_space<vmem>>) attributes {dimension_semantics = [#tpu.dimension_semantics<parallel>], iteration_bounds = array<i64: 1>, scalar_prefetch = 0 : i64, scratch_operands = 0 : i64, tpu.core_type = #tpu.core_type<tc>, window_params = [{transform_indices = @transform_0, window_bounds = array<i64: 16, 128>}, {pipeline_mode = #tpu.pipeline_mode<synchronous>, transform_indices = @transform_1, window_bounds = array<i64: 128, 128>}, {pipeline_mode = #tpu.pipeline_mode<synchronous>, transform_indices = @transform_2, window_bounds = array<i64: 1, 128>}, {pipeline_mode = #tpu.pipeline_mode<synchronous>, transform_indices = @transform_3, window_bounds = array<i64: 128, 128>}, {pipeline_mode = #tpu.pipeline_mode<synchronous>, transform_indices = @transform_4, window_bounds = array<i64: 1, 128>}, {transform_indices = @transform_5, window_bounds = array<i64: 16, 128>}]} {
    %c0 = arith.constant 0 : index
    %c0_0 = arith.constant 0 : index
    %0 = vector.load %arg1[%c0, %c0_0] : memref<16x128xf32, #tpu.memory_space<vmem>>, vector<16x128xf32>
    %c0_1 = arith.constant 0 : index
    %c0_2 = arith.constant 0 : index
    %1 = vector.load %arg2[%c0_1, %c0_2] : memref<128x128xbf16, #tpu.memory_space<vmem>>, vector<128x128xbf16>
    %c0_3 = arith.constant 0 : index
    %c0_4 = arith.constant 0 : index
    %2 = vector.load %arg3[%c0_3, %c0_4] : memref<1x128xf32, #tpu.memory_space<vmem>>, vector<1x128xf32>
    %3 = arith.mulf %0, %0 : vector<16x128xf32>
    %cst = arith.constant dense<0.000000e+00> : vector<16xf32>
    %4 = vector.multi_reduction <add>, %3, %cst [1] : vector<16x128xf32> to vector<16xf32>
    %5 = vector.shape_cast %4 : vector<16xf32> to vector<16x1xf32>
    %cst_5 = arith.constant 1.000000e-24 : f32
    %6 = vector.broadcast %cst_5 : f32 to vector<16x1xf32>
    %7 = arith.maximumf %5, %6 : vector<16x1xf32>
    %8 = math.rsqrt %7 : vector<16x1xf32>
    %9 = arith.truncf %0 : vector<16x128xf32> to vector<16x128xbf16>
    %cst_6 = arith.constant dense<0.000000e+00> : vector<16x128xf32>
    %10 = tpu.matmul %9, %1, %cst_6 {dimension_numbers = #tpu.dot_dimension_numbers<[1], [0], [0], [1], [0, 0, 1, 1], [], []>} : vector<16x128xbf16>, vector<128x128xbf16>, vector<16x128xf32> -> vector<16x128xf32>
    %11 = vector.broadcast %8 : vector<16x1xf32> to vector<16x128xf32>
    %12 = arith.mulf %10, %11 : vector<16x128xf32>
    %13 = vector.broadcast %2 : vector<1x128xf32> to vector<16x128xf32>
    %14 = arith.addf %12, %13 : vector<16x128xf32>
    %cst_7 = arith.constant 0.000000e+00 : f32
    %15 = vector.broadcast %cst_7 : f32 to vector<16x128xf32>
    %16 = arith.maximumf %14, %15 : vector<16x128xf32>
    %c0_8 = arith.constant 0 : index
    %c0_9 = arith.constant 0 : index
    %17 = vector.load %arg4[%c0_8, %c0_9] : memref<128x128xbf16, #tpu.memory_space<vmem>>, vector<128x128xbf16>
    %c0_10 = arith.constant 0 : index
    %c0_11 = arith.constant 0 : index
    %18 = vector.load %arg5[%c0_10, %c0_11] : memref<1x128xf32, #tpu.memory_space<vmem>>, vector<1x128xf32>
    %19 = arith.mulf %16, %16 : vector<16x128xf32>
    %cst_12 = arith.constant dense<0.000000e+00> : vector<16xf32>
    %20 = vector.multi_reduction <add>, %19, %cst_12 [1] : vector<16x128xf32> to vector<16xf32>
    %21 = vector.shape_cast %20 : vector<16xf32> to vector<16x1xf32>
    %cst_13 = arith.constant 1.000000e-24 : f32
    %22 = vector.broadcast %cst_13 : f32 to vector<16x1xf32>
    %23 = arith.maximumf %21, %22 : vector<16x1xf32>
    %24 = math.rsqrt %23 : vector<16x1xf32>
    %25 = arith.truncf %16 : vector<16x128xf32> to vector<16x128xbf16>
    %cst_14 = arith.constant dense<0.000000e+00> : vector<16x128xf32>
    %26 = tpu.matmul %25, %17, %cst_14 {dimension_numbers = #tpu.dot_dimension_numbers<[1], [0], [0], [1], [0, 0, 1, 1], [], []>} : vector<16x128xbf16>, vector<128x128xbf16>, vector<16x128xf32> -> vector<16x128xf32>
    %27 = vector.broadcast %24 : vector<16x1xf32> to vector<16x128xf32>
    %28 = arith.mulf %26, %27 : vector<16x128xf32>
    %29 = vector.broadcast %18 : vector<1x128xf32> to vector<16x128xf32>
    %30 = arith.addf %28, %29 : vector<16x128xf32>
    %cst_15 = arith.constant 0.000000e+00 : f32
    %31 = vector.broadcast %cst_15 : f32 to vector<16x128xf32>
    %32 = arith.maximumf %30, %31 : vector<16x128xf32>
    %c0_16 = arith.constant 0 : index
    %c0_17 = arith.constant 0 : index
    %33 = vector.load %arg6[%c0_16, %c0_17] : memref<16x128xf32, #tpu.memory_space<vmem>>, vector<16x128xf32>
    tpu.vector_store %arg6[%c0_16, %c0_17], %32 {strides = array<i32>} : memref<16x128xf32, #tpu.memory_space<vmem>>, vector<16x128xf32>,
    return
  }
  func.func @transform_0(%arg0: i32) -> (i32, i32) {
    %c0_i32 = arith.constant 0 : i32
    %c0_i32_0 = arith.constant 0 : i32
    return %arg0, %c0_i32 : i32, i32
  }
  func.func @transform_1(%arg0: i32) -> (i32, i32) {
    %c0_i32 = arith.constant 0 : i32
    %c0_i32_0 = arith.constant 0 : i32
    %c0_i32_1 = arith.constant 0 : i32
    return %c0_i32, %c0_i32_0 : i32, i32
  }
  func.func @transform_2(%arg0: i32) -> (i32, i32) {
    %c0_i32 = arith.constant 0 : i32
    %c0_i32_0 = arith.constant 0 : i32
    %c0_i32_1 = arith.constant 0 : i32
    return %c0_i32, %c0_i32_0 : i32, i32
  }
  func.func @transform_3(%arg0: i32) -> (i32, i32) {
    %c0_i32 = arith.constant 0 : i32
    %c0_i32_0 = arith.constant 0 : i32
    %c0_i32_1 = arith.constant 0 : i32
    return %c0_i32, %c0_i32_0 : i32, i32
  }
  func.func @transform_4(%arg0: i32) -> (i32, i32) {
    %c0_i32 = arith.constant 0 : i32
    %c0_i32_0 = arith.constant 0 : i32
    %c0_i32_1 = arith.constant 0 : i32
    return %c0_i32, %c0_i32_0 : i32, i32
  }
  func.func @transform_5(%arg0: i32) -> (i32, i32) {
    %c0_i32 = arith.constant 0 : i32
    %c0_i32_0 = arith.constant 0 : i32
    return %arg0, %c0_i32 : i32, i32
  }
}

module attributes {stable_mosaic.version = 11 : i64} {
  func.func @kernel(%arg0: i32, %arg1: memref<16x128xf32, #tpu.memory_space<vmem>>, %arg2: memref<128x128xbf16, #tpu.memory_space<vmem>>, %arg3: memref<1x128xf32, #tpu.memory_space<vmem>>, %arg4: memref<128x128xbf16, #tpu.memory_space<vmem>>, %arg5: memref<1x128xf32, #tpu.memory_space<vmem>>, %arg6: memref<16x128xf32, #tpu.memory_space<vmem>>) attributes {dimension_semantics = [#tpu.dimension_semantics<parallel>], iteration_bounds = array<i64: 1>, scalar_prefetch = 0 : i64, scratch_operands = 0 : i64, tpu.core_type = #tpu.core_type<tc>, window_params = [{transform_indices = @transform_0, window_bounds = array<i64: 16, 128>}, {pipeline_mode = #tpu.pipeline_mode<synchronous>, transform_indices = @transform_1, window_bounds = array<i64: 128, 128>}, {pipeline_mode = #tpu.pipeline_mode<synchronous>, transform_indices = @transform_2, window_bounds = array<i64: 1, 128>}, {pipeline_mode = #tpu.pipeline_mode<synchronous>, transform_indices = @transform_3, window_bounds = array<i64: 128, 128>}, {pipeline_mode = #tpu.pipeline_mode<synchronous>, transform_indices = @transform_4, window_bounds = array<i64: 1, 128>}, {transform_indices = @transform_5, window_bounds = array<i64: 16, 128>}]} {
    %c0 = arith.constant 0 : index
    %c0_0 = arith.constant 0 : index
    %0 = vector.load %arg1[%c0, %c0_0] : memref<16x128xf32, #tpu.memory_space<vmem>>, vector<16x128xf32>
    %c0_1 = arith.constant 0 : index
    %c0_2 = arith.constant 0 : index
    %1 = vector.load %arg2[%c0_1, %c0_2] : memref<128x128xbf16, #tpu.memory_space<vmem>>, vector<128x128xbf16>
    %c0_3 = arith.constant 0 : index
    %c0_4 = arith.constant 0 : index
    %2 = vector.load %arg3[%c0_3, %c0_4] : memref<1x128xf32, #tpu.memory_space<vmem>>, vector<1x128xf32>
    %3 = arith.mulf %0, %0 : vector<16x128xf32>
    %cst = arith.constant dense<0.000000e+00> : vector<16xf32>
    %4 = vector.multi_reduction <add>, %3, %cst [1] : vector<16x128xf32> to vector<16xf32>
    %5 = vector.shape_cast %4 : vector<16xf32> to vector<16x1xf32>
    %cst_5 = arith.constant 1.000000e-24 : f32
    %6 = vector.broadcast %cst_5 : f32 to vector<16x1xf32>
    %7 = arith.maximumf %5, %6 : vector<16x1xf32>
    %8 = math.rsqrt %7 : vector<16x1xf32>
    %9 = arith.truncf %0 : vector<16x128xf32> to vector<16x128xbf16>
    %cst_6 = arith.constant dense<0.000000e+00> : vector<16x128xf32>
    %10 = tpu.matmul %9, %1, %cst_6 {dimension_numbers = #tpu.dot_dimension_numbers<[1], [0], [0], [1], [0, 0, 1, 1], [], []>} : vector<16x128xbf16>, vector<128x128xbf16>, vector<16x128xf32> -> vector<16x128xf32>
    %11 = vector.broadcast %8 : vector<16x1xf32> to vector<16x128xf32>
    %12 = arith.mulf %10, %11 : vector<16x128xf32>
    %13 = vector.broadcast %2 : vector<1x128xf32> to vector<16x128xf32>
    %14 = arith.addf %12, %13 : vector<16x128xf32>
    %cst_7 = arith.constant 0.000000e+00 : f32
    %15 = vector.broadcast %cst_7 : f32 to vector<16x128xf32>
    %16 = arith.maximumf %14, %15 : vector<16x128xf32>
    %c0_8 = arith.constant 0 : index
    %c0_9 = arith.constant 0 : index
    %17 = vector.load %arg4[%c0_8, %c0_9] : memref<128x128xbf16, #tpu.memory_space<vmem>>, vector<128x128xbf16>
    %c0_10 = arith.constant 0 : index
    %c0_11 = arith.constant 0 : index
    %18 = vector.load %arg5[%c0_10, %c0_11] : memref<1x128xf32, #tpu.memory_space<vmem>>, vector<1x128xf32>
    %19 = arith.mulf %16, %16 : vector<16x128xf32>
    %cst_12 = arith.constant dense<0.000000e+00> : vector<16xf32>
    %20 = vector.multi_reduction <add>, %19, %cst_12 [1] : vector<16x128xf32> to vector<16xf32>
    %21 = vector.shape_cast %20 : vector<16xf32> to vector<16x1xf32>
    %cst_13 = arith.constant 1.000000e-24 : f32
    %22 = vector.broadcast %cst_13 : f32 to vector<16x1xf32>
    %23 = arith.maximumf %21, %22 : vector<16x1xf32>
    %24 = math.rsqrt %23 : vector<16x1xf32>
    %25 = arith.truncf %16 : vector<16x128xf32> to vector<16x128xbf16>
    %cst_14 = arith.constant dense<0.000000e+00> : vector<16x128xf32>
    %26 = tpu.matmul %25, %17, %cst_14 {dimension_numbers = #tpu.dot_dimension_numbers<[1], [0], [0], [1], [0, 0, 1, 1], [], []>} : vector<16x128xbf16>, vector<128x128xbf16>, vector<16x128xf32> -> vector<16x128xf32>
    %27 = vector.broadcast %24 : vector<16x1xf32> to vector<16x128xf32>
    %28 = arith.mulf %26, %27 : vector<16x128xf32>
    %29 = vector.broadcast %18 : vector<1x128xf32> to vector<16x128xf32>
    %30 = arith.addf %28, %29 : vector<16x128xf32>
    %cst_15 = arith.constant 0.000000e+00 : f32
    %31 = vector.broadcast %cst_15 : f32 to vector<16x128xf32>
    %32 = arith.maximumf %30, %31 : vector<16x128xf32>
    %c0_16 = arith.constant 0 : index
    %c0_17 = arith.constant 0 : index
    %33 = vector.load %arg6[%c0_16, %c0_17] : memref<16x128xf32, #tpu.memory_space<vmem>>, vector<16x128xf32>
    tpu.vector_store %arg6[%c0_16, %c0_17], %32 {strides = array<i32>} : memref<16x128xf32, #tpu.memory_space<vmem>>, vector<16x128xf32>,
    return
  }
  func.func @transform_0(%arg0: i32) -> (i32, i32) {
    %c0_i32 = arith.constant 0 : i32
    %c0_i32_0 = arith.constant 0 : i32
    return %arg0, %c0_i32 : i32, i32
  }
  func.func @transform_1(%arg0: i32) -> (i32, i32) {
    %c0_i32 = arith.constant 0 : i32
    %c0_i32_0 = arith.constant 0 : i32
    %c0_i32_1 = arith.constant 0 : i32
    return %c0_i32, %c0_i32_0 : i32, i32
  }
  func.func @transform_2(%arg0: i32) -> (i32, i32) {
    %c0_i32 = arith.constant 0 : i32
    %c0_i32_0 = arith.constant 0 : i32
    %c0_i32_1 = arith.constant 0 : i32
    return %c0_i32, %c0_i32_0 : i32, i32
  }
  func.func @transform_3(%arg0: i32) -> (i32, i32) {
    %c0_i32 = arith.constant 0 : i32
    %c0_i32_0 = arith.constant 0 : i32
    %c0_i32_1 = arith.constant 0 : i32
    return %c0_i32, %c0_i32_0 : i32, i32
  }
  func.func @transform_4(%arg0: i32) -> (i32, i32) {
    %c0_i32 = arith.constant 0 : i32
    %c0_i32_0 = arith.constant 0 : i32
    %c0_i32_1 = arith.constant 0 : i32
    return %c0_i32, %c0_i32_0 : i32, i32
  }
  func.func @transform_5(%arg0: i32) -> (i32, i32) {
    %c0_i32 = arith.constant 0 : i32
    %c0_i32_0 = arith.constant 0 : i32
    return %arg0, %c0_i32 : i32, i32
  }
}

</mosaic_0001>

<bundles_post_ra>
// kernel: tpu_custom_call.1
= control target key start
LH: loop header
LB: loop body
LE: loop exit
PB: predicated region body
PF: predicated region fallthrough
CT: control target
= control target key end

     0   :  { %10 = vsyncpa [#allocation3], 0  ;;  %s653_s0 = inlined_call_operand.hbm [shape: f32[16,128], index: 0, kind: input, shape index: {}]   ;;  %s654_s1 = inlined_call_operand.hbm [shape: bf16[128,128], index: 1, kind: input, shape index: {}]   ;;  %s655_s2 = inlined_call_operand.vmem [shape: f32[1,128], index: 2, kind: input, shape index: {}]   ;;  %s656_s3 = inlined_call_operand.hbm [shape: bf16[128,128], index: 3, kind: input, shape index: {}]   ;;  %s657_s4 = inlined_call_operand.vmem [shape: f32[1,128], index: 4, kind: input, shape index: {}]   ;;  %s658_s5 = inlined_call_operand.hbm [shape: f32[16,128], index: 5, kind: output, shape index: {}]  }
   0x1   :  { %11 = vsyncpa [#allocation6], 0 }
   0x2   :  { %12 = vsyncpa [#allocation4], 0  ;;  %s547_s18 = smov [#allocation5]   ;;  %s453_s22 = scalar_lea.hbm %s654_s1, 1024 }
   0x3   :  { %s30_s19 = sshll.u32 %s547_s18, 4  ;;  %p454_p0 = scmp.ne.s32.totalorder %s654_s1, %s453_s22  ;;  %s31_s19 = int_to_ptr.vmem [resolvable:$true] %s30_s19 }
   0x4   :  { %p457_p1 = scmp.lt.u32.totalorder %s453_s22, %s654_s1 }
   0x6   :  { %p459_p2 = pnand %p457_p1, %p454_p0 }
   0x8   :  { %462 = shalt.err (!%p459_p2)
}
   0x9   :  { %s463_s27 = scalar_lea.vmem %s31_s19, 1024  ;;  %p468_p4 = scmp.lt.s32.totalorder %s31_s19, %s31_s19 }
   0xa   :  { %p464_p3 = scmp.ne.s32.totalorder %s31_s19, %s463_s27  ;;  %p469_p5 = scmp.lt.s32.totalorder %s463_s27, %s463_s27 }
   0xc   :  { %p470_p6 = por %p469_p5, %p468_p4 }
   0xe   :  { %p471_p7 = pnand %p470_p6, %p464_p3 }
  0x10   :  { %474 = shalt.err (!%p471_p7)
}
  0x11   :  { %s548_s28 = smov 64   ;;  %s549_s29 = smov 4  }
  0x12   :  { %36 = dma.hbm_to_vmem [thread:$0]  %s654_s1, 1024, %s31_s19, [#allocation6], %s548_s28, %s548_s28, %s549_s29  }
  0x13   :  { %s550_s7 = smov [#allocation2]   ;;  %s475_s11 = scalar_lea.hbm %s653_s0, 256 }
  0x14   :  { %s18_s8 = sshll.u32 %s550_s7, 4  ;;  %p476_p8 = scmp.ne.s32.totalorder %s653_s0, %s475_s11  ;;  %s19_s8 = int_to_ptr.vmem [resolvable:$true] %s18_s8 }
  0x15   :  { %p479_p9 = scmp.lt.u32.totalorder %s475_s11, %s653_s0 }
  0x17   :  { %p481_p10 = pnand %p479_p9, %p476_p8 }
  0x19   :  { %484 = shalt.err (!%p481_p10)
}
  0x1a   :  { %s485_s16 = scalar_lea.vmem %s19_s8, 256  ;;  %p490_p12 = scmp.lt.s32.totalorder %s19_s8, %s19_s8 }
  0x1b   :  { %p486_p11 = scmp.ne.s32.totalorder %s19_s8, %s485_s16  ;;  %p491_p13 = scmp.lt.s32.totalorder %s485_s16, %s485_s16 }
  0x1d   :  { %p492_p0 = por %p491_p13, %p490_p12 }
  0x1f   :  { %p493_p1 = pnand %p492_p0, %p486_p11 }
  0x21   :  { %496 = shalt.err (!%p493_p1)
}
  0x22   :  { %s551_s1 = smov 128   ;;  %s552_s17 = smov 8  }
  0x23   :  { %24 = dma.hbm_to_vmem [thread:$0]  %s653_s0, 256, %s19_s8, [#allocation3], %s551_s1, %s551_s1, %s552_s17  }
  0x24   :  { %s553_s20 = smov [#allocation7]   ;;  %s497_s24 = scalar_lea.hbm %s656_s3, 1024 }
  0x25   :  { %s44_s21 = sshll.u32 %s553_s20, 4  ;;  %p498_p2 = scmp.ne.s32.totalorder %s656_s3, %s497_s24  ;;  %s45_s21 = int_to_ptr.vmem [resolvable:$true] %s44_s21 }
  0x26   :  { %p501_p3 = scmp.lt.u32.totalorder %s497_s24, %s656_s3 }
  0x28   :  { %p503_p4 = pnand %p501_p3, %p498_p2 }
  0x2a   :  { %506 = shalt.err (!%p503_p4)
}
  0x2b   :  { %s507_s6 = scalar_lea.vmem %s45_s21, 1024  ;;  %p512_p6 = scmp.lt.s32.totalorder %s45_s21, %s45_s21 }
  0x2c   :  { %p508_p5 = scmp.ne.s32.totalorder %s45_s21, %s507_s6  ;;  %p513_p7 = scmp.lt.s32.totalorder %s507_s6, %s507_s6 }
  0x2e   :  { %p514_p8 = por %p513_p7, %p512_p6 }
  0x30   :  { %p515_p9 = pnand %p514_p8, %p508_p5 }
  0x32   :  { %518 = shalt.err (!%p515_p9)
}
  0x33   :  { %50 = dma.hbm_to_vmem [thread:$0]  %s656_s3, 1024, %s45_s21, [#allocation6], %s548_s28, %s548_s28, %s549_s29  }
  0x34   :  { %541 = dma.done.wait [#allocation3], 256  }
  0x35   :  { %542 = vsyncadd [#allocation3], 4294967040 }
  0x36   :  { %543 = dma.done.wait [#allocation6], 2048  }
  0x37   :  { %544 = vsyncadd [#allocation6], 4294965248  ;;  %v554_v0 = vmov 0.0   ;;  %vm555_vm0 = vmmov 0   ;;  %v429_v1 = vld [vmem:[#allocation5] sm:$0xff]   ;;  %v430_v2 = vld [vmem:[#allocation5 + $0x8] sm:$0xff]  }
  0x38   :  { %379 = vmatprep.subr.bf16.mxu0 %v554_v0  ;;  %395 = vmatprep.mubr.msk.bf16.mxu0 %vm555_vm0, %v554_v0  ;;  %v431_v3 = vld [vmem:[#allocation5 + $0x10] sm:$0xff]   ;;  %v432_v4 = vld [vmem:[#allocation5 + $0x18] sm:$0xff]   ;;  %v437_v8 = vld [vmem:[#allocation7] sm:$0xff]   ;;  %s556_s8 = smov [#allocation8]  }
  0x39   :  { %399 = vmatprep.subr.bf16.mxu1 %v554_v0  ;;  %415 = vmatprep.mubr.msk.bf16.mxu1 %vm555_vm0, %v554_v0  ;;  %v63_v5 = vld [vmem:[#allocation2] sm:$0xff]  ;;  %v64_v6 = vld [vmem:[#allocation2 + $0x8] sm:$0xff]  ;;  %v438_v9 = vld [vmem:[#allocation7 + $0x8] sm:$0xff]   ;;  %s330_s9 = sshll.u32 %s556_s8, 4  ;;  %s331_s9 = int_to_ptr.vmem [resolvable:$true] %s330_s9 }
  0x3a   :  { %380 = vmatpush3.bf16.msra.mxu0 %v429_v1  ;;  %v82_v7 = vmul.f32 %v63_v5, %v63_v5  ;;  %v83_v10 = vmul.f32 %v64_v6, %v64_v6  ;;  %400 = vmatpush3.bf16.msra.mxu1 %v437_v8  ;;  %v433_v11 = vld [vmem:[#allocation5 + $0x20] sm:$0xff]   ;;  %v434_v12 = vld [vmem:[#allocation5 + $0x28] sm:$0xff]   ;;  %v435_v13 = vld [vmem:[#allocation5 + $0x30] sm:$0xff]   ;;  %v92_v16 = vpack.c.bf16 %v64_v6, %v63_v5  ;;  %s519_s10 = scalar_lea.vmem %s331_s9, 256  ;;  %p524_p11 = scmp.lt.s32.totalorder %s331_s9, %s331_s9 }
  0x3b   :  { %381 = vmatprep.subr.bf16.mxu0 %v554_v0  ;;  %401 = vmatprep.subr.bf16.mxu1 %v554_v0  ;;  %v436_v14 = vld [vmem:[#allocation5 + $0x38] sm:$0xff]   ;;  %v439_v15 = vld [vmem:[#allocation7 + $0x10] sm:$0xff]   ;;  %v441_v18 = vld [vmem:[#allocation7 + $0x20] sm:$0xff]   ;;  %p520_p10 = scmp.ne.s32.totalorder %s331_s9, %s519_s10  ;;  %p525_p12 = scmp.lt.s32.totalorder %s519_s10, %s519_s10 }
  0x3c   :  { %84 = vadd.xlane.f32.xlu0 %v82_v7  ;;  %v440_v17 = vld [vmem:[#allocation7 + $0x18] sm:$0xff]   ;;  %v442_v19 = vld [vmem:[#allocation7 + $0x28] sm:$0xff]   ;;  %v443_v20 = vld [vmem:[#allocation7 + $0x30] sm:$0xff]  }
  0x3d   :  { %v444_v21 = vld [vmem:[#allocation7 + $0x38] sm:$0xff]   ;;  %v351_v29 = vld [vmem:[%s655_s2] ss:$0 sm:$0xff]  ;;  %p526_p13 = por %p525_p12, %p524_p11 }
  0x3e   :  { %382 = vmatpush3.bf16.msra.mxu0 %v430_v2  ;;  %402 = vmatpush3.bf16.msra.mxu1 %v438_v9  ;;  %v360_v47 = vld [vmem:[%s657_s4] ss:$0 sm:$0xff] }
  0x3f   :  { %383 = vmatprep.subr.bf16.mxu0 %v554_v0  ;;  %403 = vmatprep.subr.bf16.mxu1 %v554_v0  ;;  %p527_p0 = pnand %p526_p13, %p520_p10 }
  0x40   :  { %86 = vadd.xlane.f32.xlu0 %v83_v10 }
  0x42   :  { %384 = vmatpush3.bf16.msra.mxu0 %v431_v3  ;;  %404 = vmatpush3.bf16.msra.mxu1 %v439_v15 }
  0x43   :  { %385 = vmatprep.subr.bf16.mxu0 %v554_v0  ;;  %405 = vmatprep.subr.bf16.mxu1 %v554_v0 }
  0x46   :  { %386 = vmatpush3.bf16.msra.mxu0 %v432_v4  ;;  %406 = vmatpush3.bf16.msra.mxu1 %v440_v17 }
  0x47   :  { %387 = vmatprep.subr.bf16.mxu0 %v554_v0  ;;  %407 = vmatprep.subr.bf16.mxu1 %v554_v0 }
  0x4a   :  { %388 = vmatpush3.bf16.msra.mxu0 %v433_v11  ;;  %408 = vmatpush3.bf16.msra.mxu1 %v441_v18 }
  0x4b   :  { %389 = vmatprep.subr.bf16.mxu0 %v554_v0  ;;  %409 = vmatprep.subr.bf16.mxu1 %v554_v0 }
  0x4e   :  { %390 = vmatpush3.bf16.msra.mxu0 %v434_v12  ;;  %410 = vmatpush3.bf16.msra.mxu1 %v442_v19 }
  0x4f   :  { %391 = vmatprep.subr.bf16.mxu0 %v554_v0  ;;  %411 = vmatprep.subr.bf16.mxu1 %v554_v0 }
  0x52   :  { %392 = vmatpush3.bf16.msra.mxu0 %v435_v13  ;;  %412 = vmatpush3.bf16.msra.mxu1 %v443_v20 }
  0x53   :  { %393 = vmatprep.subr.bf16.mxu0 %v554_v0  ;;  %413 = vmatprep.subr.bf16.mxu1 %v554_v0 }
  0x56   :  { %394 = vmatpush3.bf16.msra.mxu0 %v436_v14  ;;  %414 = vmatpush3.bf16.msra.mxu1 %v444_v21 }
  0x59   :  { %396 = vmatmul.mubr.bf16.vlgmr.msra.gmra.mrb[0].mxu0 %v92_v16 }
  0xc9   :  { %v85_v22 = vpop.xlane.xlu0 %84 }
  0xca   :  { %v88_v24 = vmax.f32 %v85_v22, 1e-24 }
  0xcc   :  { %445 = vrsqrt.f32 %v88_v24 }
  0xcd   :  { %v87_v23 = vpop.xlane.xlu0 %86 }
  0xce   :  { %v89_v25 = vmax.f32 %v87_v23, 1e-24 }
  0xd0   :  { %447 = vrsqrt.f32 %v89_v25 }
  0xd6   :  { %v446_v26 = vpop.eup %445 }
  0xda   :  { %v448_v27 = vpop.eup %447 }
 0x12c   :  { %v175_v28 = vpop.f32.mrb[0].mxu0 }
 0x12d   :  { %v182_v30 = vmul.f32 %v446_v26, %v175_v28  ;;  %v397_v31 = vpop.f32.mrb[1].mxu0 }
 0x12e   :  { %v178_v32 = vpop.f32.mrb[2].mxu0 }
 0x12f   :  { %v183_v33 = vmul.f32 %v448_v27, %v178_v32  ;;  %v398_v34 = vpop.f32.mrb[3].mxu0  ;;  %v190_v35 = vadd.f32 %v351_v29, %v182_v30 }
 0x131   :  { %v191_v36 = vadd.f32 %v351_v29, %v183_v33  ;;  %v192_v37 = vmax.f32 %v190_v35, 0.0 }
 0x133   :  { %v193_v38 = vmax.f32 %v191_v36, 0.0  ;;  %v211_v39 = vmul.f32 %v192_v37, %v192_v37 }
 0x135   :  { %213 = vadd.xlane.f32.xlu1 %v211_v39  ;;  %v221_v40 = vpack.c.bf16 %v193_v38, %v192_v37  ;;  %v212_v41 = vmul.f32 %v193_v38, %v193_v38 }
 0x137   :  { %416 = vmatmul.mubr.bf16.vlgmr.msra.gmra.mrb[0].mxu1 %v221_v40 }
 0x139   :  { %215 = vadd.xlane.f32.xlu1 %v212_v41 }
 0x1c2   :  { %v214_v42 = vpop.xlane.xlu1 %213 }
 0x1c3   :  { %v217_v44 = vmax.f32 %v214_v42, 1e-24 }
 0x1c5   :  { %449 = vrsqrt.f32 %v217_v44 }
 0x1c6   :  { %v216_v43 = vpop.xlane.xlu1 %215 }
 0x1c7   :  { %v218_v45 = vmax.f32 %v216_v43, 1e-24 }
 0x1c9   :  { %451 = vrsqrt.f32 %v218_v45 }
 0x1cf   :  { %v450_v46 = vpop.eup %449 }
 0x1d3   :  { %v452_v51 = vpop.eup %451 }
 0x20a   :  { %v304_v48 = vpop.f32.mrb[0].mxu1 }
 0x20b   :  { %v311_v49 = vmul.f32 %v450_v46, %v304_v48  ;;  %v417_v50 = vpop.f32.mrb[1].mxu1 }
 0x20c   :  { %v307_v52 = vpop.f32.mrb[2].mxu1 }
 0x20d   :  { %v319_v53 = vadd.f32 %v360_v47, %v311_v49  ;;  %v312_v54 = vmul.f32 %v452_v51, %v307_v52  ;;  %v418_v55 = vpop.f32.mrb[3].mxu1 }
 0x20f   :  { %v321_v56 = vmax.f32 %v319_v53, 0.0  ;;  %v320_v57 = vadd.f32 %v360_v47, %v312_v54 }
 0x211   :  { %323 = vst [vmem:[#allocation8] sm:$0xff] %v321_v56  ;;  %v322_v58 = vmax.f32 %v320_v57, 0.0 }
 0x213   :  { %324 = vst [vmem:[#allocation8 + $0x8] sm:$0xff] %v322_v58 }
 0x214   :  { %530 = shalt.err (!%p527_p0)
}
 0x215   :  { %s531_s12 = scalar_lea.hbm %s658_s5, 256 }
 0x216   :  { %p532_p1 = scmp.ne.s32.totalorder %s658_s5, %s531_s12  ;;  %p535_p2 = scmp.lt.u32.totalorder %s531_s12, %s658_s5 }
 0x218   :  { %p537_p3 = pnand %p535_p2, %p532_p1 }
 0x21a   :  { %540 = shalt.err (!%p537_p3)
}
 0x21b   :  { %336 = dma.vmem_to_hbm [thread:$0]  %s331_s9, 256, %s658_s5, [#allocation4], %s551_s1, %s551_s1, %s552_s17  }
 0x21c   :  { %545 = dma.done.wait [#allocation4], 256  }
 0x21d   :  { %546 = vsyncadd [#allocation4], 4294967040 }
 0x21e   :  { %340 = vsyncpa [#allocation3], 1 }
 0x21f   :  { %341 = vsyncpa [#allocation6], 1 }
 0x220   :  { %342 = vsyncpa [#allocation4], 1 }

// kernel: tpu_custom_call.1
= control target key start
LH: loop header
LB: loop body
LE: loop exit
PB: predicated region body
PF: predicated region fallthrough
CT: control target
= control target key end

     0   :  { %10 = vsyncpa [#allocation3], 0  ;;  %s653_s0 = inlined_call_operand.hbm [shape: f32[16,128], index: 0, kind: input, shape index: {}]   ;;  %s654_s1 = inlined_call_operand.hbm [shape: bf16[128,128], index: 1, kind: input, shape index: {}]   ;;  %s655_s2 = inlined_call_operand.vmem [shape: f32[1,128], index: 2, kind: input, shape index: {}]   ;;  %s656_s3 = inlined_call_operand.hbm [shape: bf16[128,128], index: 3, kind: input, shape index: {}]   ;;  %s657_s4 = inlined_call_operand.vmem [shape: f32[1,128], index: 4, kind: input, shape index: {}]   ;;  %s658_s5 = inlined_call_operand.hbm [shape: f32[16,128], index: 5, kind: output, shape index: {}]  }
   0x1   :  { %11 = vsyncpa [#allocation6], 0 }
   0x2   :  { %12 = vsyncpa [#allocation4], 0  ;;  %s547_s18 = smov [#allocation5]   ;;  %s453_s22 = scalar_lea.hbm %s654_s1, 1024 }
   0x3   :  { %s30_s19 = sshll.u32 %s547_s18, 4  ;;  %p454_p0 = scmp.ne.s32.totalorder %s654_s1, %s453_s22  ;;  %s31_s19 = int_to_ptr.vmem [resolvable:$true] %s30_s19 }
   0x4   :  { %p457_p1 = scmp.lt.u32.totalorder %s453_s22, %s654_s1 }
   0x6   :  { %p459_p2 = pnand %p457_p1, %p454_p0 }
   0x8   :  { %462 = shalt.err (!%p459_p2)
}
   0x9   :  { %s463_s27 = scalar_lea.vmem %s31_s19, 1024  ;;  %p468_p4 = scmp.lt.s32.totalorder %s31_s19, %s31_s19 }
   0xa   :  { %p464_p3 = scmp.ne.s32.totalorder %s31_s19, %s463_s27  ;;  %p469_p5 = scmp.lt.s32.totalorder %s463_s27, %s463_s27 }
   0xc   :  { %p470_p6 = por %p469_p5, %p468_p4 }
   0xe   :  { %p471_p7 = pnand %p470_p6, %p464_p3 }
  0x10   :  { %474 = shalt.err (!%p471_p7)
}
  0x11   :  { %s548_s28 = smov 64   ;;  %s549_s29 = smov 4  }
  0x12   :  { %36 = dma.hbm_to_vmem [thread:$0]  %s654_s1, 1024, %s31_s19, [#allocation6], %s548_s28, %s548_s28, %s549_s29  }
  0x13   :  { %s550_s7 = smov [#allocation2]   ;;  %s475_s11 = scalar_lea.hbm %s653_s0, 256 }
  0x14   :  { %s18_s8 = sshll.u32 %s550_s7, 4  ;;  %p476_p8 = scmp.ne.s32.totalorder %s653_s0, %s475_s11  ;;  %s19_s8 = int_to_ptr.vmem [resolvable:$true] %s18_s8 }
  0x15   :  { %p479_p9 = scmp.lt.u32.totalorder %s475_s11, %s653_s0 }
  0x17   :  { %p481_p10 = pnand %p479_p9, %p476_p8 }
  0x19   :  { %484 = shalt.err (!%p481_p10)
}
  0x1a   :  { %s485_s16 = scalar_lea.vmem %s19_s8, 256  ;;  %p490_p12 = scmp.lt.s32.totalorder %s19_s8, %s19_s8 }
  0x1b   :  { %p486_p11 = scmp.ne.s32.totalorder %s19_s8, %s485_s16  ;;  %p491_p13 = scmp.lt.s32.totalorder %s485_s16, %s485_s16 }
  0x1d   :  { %p492_p0 = por %p491_p13, %p490_p12 }
  0x1f   :  { %p493_p1 = pnand %p492_p0, %p486_p11 }
  0x21   :  { %496 = shalt.err (!%p493_p1)
}
  0x22   :  { %s551_s1 = smov 128   ;;  %s552_s17 = smov 8  }
  0x23   :  { %24 = dma.hbm_to_vmem [thread:$0]  %s653_s0, 256, %s19_s8, [#allocation3], %s551_s1, %s551_s1, %s552_s17  }
  0x24   :  { %s553_s20 = smov [#allocation7]   ;;  %s497_s24 = scalar_lea.hbm %s656_s3, 1024 }
  0x25   :  { %s44_s21 = sshll.u32 %s553_s20, 4  ;;  %p498_p2 = scmp.ne.s32.totalorder %s656_s3, %s497_s24  ;;  %s45_s21 = int_to_ptr.vmem [resolvable:$true] %s44_s21 }
  0x26   :  { %p501_p3 = scmp.lt.u32.totalorder %s497_s24, %s656_s3 }
  0x28   :  { %p503_p4 = pnand %p501_p3, %p498_p2 }
  0x2a   :  { %506 = shalt.err (!%p503_p4)
}
  0x2b   :  { %s507_s6 = scalar_lea.vmem %s45_s21, 1024  ;;  %p512_p6 = scmp.lt.s32.totalorder %s45_s21, %s45_s21 }
  0x2c   :  { %p508_p5 = scmp.ne.s32.totalorder %s45_s21, %s507_s6  ;;  %p513_p7 = scmp.lt.s32.totalorder %s507_s6, %s507_s6 }
  0x2e   :  { %p514_p8 = por %p513_p7, %p512_p6 }
  0x30   :  { %p515_p9 = pnand %p514_p8, %p508_p5 }
  0x32   :  { %518 = shalt.err (!%p515_p9)
}
  0x33   :  { %50 = dma.hbm_to_vmem [thread:$0]  %s656_s3, 1024, %s45_s21, [#allocation6], %s548_s28, %s548_s28, %s549_s29  }
  0x34   :  { %541 = dma.done.wait [#allocation3], 256  }
  0x35   :  { %542 = vsyncadd [#allocation3], 4294967040 }
  0x36   :  { %543 = dma.done.wait [#allocation6], 2048  }
  0x37   :  { %544 = vsyncadd [#allocation6], 4294965248  ;;  %v554_v0 = vmov 0.0   ;;  %vm555_vm0 = vmmov 0   ;;  %v429_v1 = vld [vmem:[#allocation5] sm:$0xff]   ;;  %v430_v2 = vld [vmem:[#allocation5 + $0x8] sm:$0xff]  }
  0x38   :  { %379 = vmatprep.subr.bf16.mxu0 %v554_v0  ;;  %395 = vmatprep.mubr.msk.bf16.mxu0 %vm555_vm0, %v554_v0  ;;  %v431_v3 = vld [vmem:[#allocation5 + $0x10] sm:$0xff]   ;;  %v432_v4 = vld [vmem:[#allocation5 + $0x18] sm:$0xff]   ;;  %v437_v8 = vld [vmem:[#allocation7] sm:$0xff]   ;;  %s556_s8 = smov [#allocation8]  }
  0x39   :  { %399 = vmatprep.subr.bf16.mxu1 %v554_v0  ;;  %415 = vmatprep.mubr.msk.bf16.mxu1 %vm555_vm0, %v554_v0  ;;  %v63_v5 = vld [vmem:[#allocation2] sm:$0xff]  ;;  %v64_v6 = vld [vmem:[#allocation2 + $0x8] sm:$0xff]  ;;  %v438_v9 = vld [vmem:[#allocation7 + $0x8] sm:$0xff]   ;;  %s330_s9 = sshll.u32 %s556_s8, 4  ;;  %s331_s9 = int_to_ptr.vmem [resolvable:$true] %s330_s9 }
  0x3a   :  { %380 = vmatpush3.bf16.msra.mxu0 %v429_v1  ;;  %v82_v7 = vmul.f32 %v63_v5, %v63_v5  ;;  %v83_v10 = vmul.f32 %v64_v6, %v64_v6  ;;  %400 = vmatpush3.bf16.msra.mxu1 %v437_v8  ;;  %v433_v11 = vld [vmem:[#allocation5 + $0x20] sm:$0xff]   ;;  %v434_v12 = vld [vmem:[#allocation5 + $0x28] sm:$0xff]   ;;  %v435_v13 = vld [vmem:[#allocation5 + $0x30] sm:$0xff]   ;;  %v92_v16 = vpack.c.bf16 %v64_v6, %v63_v5  ;;  %s519_s10 = scalar_lea.vmem %s331_s9, 256  ;;  %p524_p11 = scmp.lt.s32.totalorder %s331_s9, %s331_s9 }
  0x3b   :  { %381 = vmatprep.subr.bf16.mxu0 %v554_v0  ;;  %401 = vmatprep.subr.bf16.mxu1 %v554_v0  ;;  %v436_v14 = vld [vmem:[#allocation5 + $0x38] sm:$0xff]   ;;  %v439_v15 = vld [vmem:[#allocation7 + $0x10] sm:$0xff]   ;;  %v441_v18 = vld [vmem:[#allocation7 + $0x20] sm:$0xff]   ;;  %p520_p10 = scmp.ne.s32.totalorder %s331_s9, %s519_s10  ;;  %p525_p12 = scmp.lt.s32.totalorder %s519_s10, %s519_s10 }
  0x3c   :  { %84 = vadd.xlane.f32.xlu0 %v82_v7  ;;  %v440_v17 = vld [vmem:[#allocation7 + $0x18] sm:$0xff]   ;;  %v442_v19 = vld [vmem:[#allocation7 + $0x28] sm:$0xff]   ;;  %v443_v20 = vld [vmem:[#allocation7 + $0x30] sm:$0xff]  }
  0x3d   :  { %v444_v21 = vld [vmem:[#allocation7 + $0x38] sm:$0xff]   ;;  %v351_v29 = vld [vmem:[%s655_s2] ss:$0 sm:$0xff]  ;;  %p526_p13 = por %p525_p12, %p524_p11 }
  0x3e   :  { %382 = vmatpush3.bf16.msra.mxu0 %v430_v2  ;;  %402 = vmatpush3.bf16.msra.mxu1 %v438_v9  ;;  %v360_v47 = vld [vmem:[%s657_s4] ss:$0 sm:$0xff] }
  0x3f   :  { %383 = vmatprep.subr.bf16.mxu0 %v554_v0  ;;  %403 = vmatprep.subr.bf16.mxu1 %v554_v0  ;;  %p527_p0 = pnand %p526_p13, %p520_p10 }
  0x40   :  { %86 = vadd.xlane.f32.xlu0 %v83_v10 }
  0x42   :  { %384 = vmatpush3.bf16.msra.mxu0 %v431_v3  ;;  %404 = vmatpush3.bf16.msra.mxu1 %v439_v15 }
  0x43   :  { %385 = vmatprep.subr.bf16.mxu0 %v554_v0  ;;  %405 = vmatprep.subr.bf16.mxu1 %v554_v0 }
  0x46   :  { %386 = vmatpush3.bf16.msra.mxu0 %v432_v4  ;;  %406 = vmatpush3.bf16.msra.mxu1 %v440_v17 }
  0x47   :  { %387 = vmatprep.subr.bf16.mxu0 %v554_v0  ;;  %407 = vmatprep.subr.bf16.mxu1 %v554_v0 }
  0x4a   :  { %388 = vmatpush3.bf16.msra.mxu0 %v433_v11  ;;  %408 = vmatpush3.bf16.msra.mxu1 %v441_v18 }
  0x4b   :  { %389 = vmatprep.subr.bf16.mxu0 %v554_v0  ;;  %409 = vmatprep.subr.bf16.mxu1 %v554_v0 }
  0x4e   :  { %390 = vmatpush3.bf16.msra.mxu0 %v434_v12  ;;  %410 = vmatpush3.bf16.msra.mxu1 %v442_v19 }
  0x4f   :  { %391 = vmatprep.subr.bf16.mxu0 %v554_v0  ;;  %411 = vmatprep.subr.bf16.mxu1 %v554_v0 }
  0x52   :  { %392 = vmatpush3.bf16.msra.mxu0 %v435_v13  ;;  %412 = vmatpush3.bf16.msra.mxu1 %v443_v20 }
  0x53   :  { %393 = vmatprep.subr.bf16.mxu0 %v554_v0  ;;  %413 = vmatprep.subr.bf16.mxu1 %v554_v0 }
  0x56   :  { %394 = vmatpush3.bf16.msra.mxu0 %v436_v14  ;;  %414 = vmatpush3.bf16.msra.mxu1 %v444_v21 }
  0x59   :  { %396 = vmatmul.mubr.bf16.vlgmr.msra.gmra.mrb[0].mxu0 %v92_v16 }
  0xc9   :  { %v85_v22 = vpop.xlane.xlu0 %84 }
  0xca   :  { %v88_v24 = vmax.f32 %v85_v22, 1e-24 }
  0xcc   :  { %445 = vrsqrt.f32 %v88_v24 }
  0xcd   :  { %v87_v23 = vpop.xlane.xlu0 %86 }
  0xce   :  { %v89_v25 = vmax.f32 %v87_v23, 1e-24 }
  0xd0   :  { %447 = vrsqrt.f32 %v89_v25 }
  0xd6   :  { %v446_v26 = vpop.eup %445 }
  0xda   :  { %v448_v27 = vpop.eup %447 }
 0x12c   :  { %v175_v28 = vpop.f32.mrb[0].mxu0 }
 0x12d   :  { %v182_v30 = vmul.f32 %v446_v26, %v175_v28  ;;  %v397_v31 = vpop.f32.mrb[1].mxu0 }
 0x12e   :  { %v178_v32 = vpop.f32.mrb[2].mxu0 }
 0x12f   :  { %v183_v33 = vmul.f32 %v448_v27, %v178_v32  ;;  %v398_v34 = vpop.f32.mrb[3].mxu0  ;;  %v190_v35 = vadd.f32 %v351_v29, %v182_v30 }
 0x131   :  { %v191_v36 = vadd.f32 %v351_v29, %v183_v33  ;;  %v192_v37 = vmax.f32 %v190_v35, 0.0 }
 0x133   :  { %v193_v38 = vmax.f32 %v191_v36, 0.0  ;;  %v211_v39 = vmul.f32 %v192_v37, %v192_v37 }
 0x135   :  { %213 = vadd.xlane.f32.xlu1 %v211_v39  ;;  %v221_v40 = vpack.c.bf16 %v193_v38, %v192_v37  ;;  %v212_v41 = vmul.f32 %v193_v38, %v193_v38 }
 0x137   :  { %416 = vmatmul.mubr.bf16.vlgmr.msra.gmra.mrb[0].mxu1 %v221_v40 }
 0x139   :  { %215 = vadd.xlane.f32.xlu1 %v212_v41 }
 0x1c2   :  { %v214_v42 = vpop.xlane.xlu1 %213 }
 0x1c3   :  { %v217_v44 = vmax.f32 %v214_v42, 1e-24 }
 0x1c5   :  { %449 = vrsqrt.f32 %v217_v44 }
 0x1c6   :  { %v216_v43 = vpop.xlane.xlu1 %215 }
 0x1c7   :  { %v218_v45 = vmax.f32 %v216_v43, 1e-24 }
 0x1c9   :  { %451 = vrsqrt.f32 %v218_v45 }
 0x1cf   :  { %v450_v46 = vpop.eup %449 }
 0x1d3   :  { %v452_v51 = vpop.eup %451 }
 0x20a   :  { %v304_v48 = vpop.f32.mrb[0].mxu1 }
 0x20b   :  { %v311_v49 = vmul.f32 %v450_v46, %v304_v48  ;;  %v417_v50 = vpop.f32.mrb[1].mxu1 }
 0x20c   :  { %v307_v52 = vpop.f32.mrb[2].mxu1 }
 0x20d   :  { %v319_v53 = vadd.f32 %v360_v47, %v311_v49  ;;  %v312_v54 = vmul.f32 %v452_v51, %v307_v52  ;;  %v418_v55 = vpop.f32.mrb[3].mxu1 }
 0x20f   :  { %v321_v56 = vmax.f32 %v319_v53, 0.0  ;;  %v320_v57 = vadd.f32 %v360_v47, %v312_v54 }
 0x211   :  { %323 = vst [vmem:[#allocation8] sm:$0xff] %v321_v56  ;;  %v322_v58 = vmax.f32 %v320_v57, 0.0 }
 0x213   :  { %324 = vst [vmem:[#allocation8 + $0x8] sm:$0xff] %v322_v58 }
 0x214   :  { %530 = shalt.err (!%p527_p0)
}
 0x215   :  { %s531_s12 = scalar_lea.hbm %s658_s5, 256 }
 0x216   :  { %p532_p1 = scmp.ne.s32.totalorder %s658_s5, %s531_s12  ;;  %p535_p2 = scmp.lt.u32.totalorder %s531_s12, %s658_s5 }
 0x218   :  { %p537_p3 = pnand %p535_p2, %p532_p1 }
 0x21a   :  { %540 = shalt.err (!%p537_p3)
}
 0x21b   :  { %336 = dma.vmem_to_hbm [thread:$0]  %s331_s9, 256, %s658_s5, [#allocation4], %s551_s1, %s551_s1, %s552_s17  }
 0x21c   :  { %545 = dma.done.wait [#allocation4], 256  }
 0x21d   :  { %546 = vsyncadd [#allocation4], 4294967040 }
 0x21e   :  { %340 = vsyncpa [#allocation3], 1 }
 0x21f   :  { %341 = vsyncpa [#allocation6], 1 }
 0x220   :  { %342 = vsyncpa [#allocation4], 1 }

</bundles_post_ra>
